<compile_context>
chip_gen: v7x
topology: tpu7x:2x2x1
jax: 0.10.0
libtpu: 0.0.40
codegen_flags: <defaults>
</compile_context>

<pallas_src>
import functools

import jax
import jax.numpy as jnp
from jax import lax
from jax.experimental import pallas as pl
from jax.experimental.pallas import tpu as pltpu

C_DIM = 32        # c_dim of ProjectedDiscriminator (== DiscHead `channels`)
CMAP_DIM = 3      # DiscHead hidden width (cmap_dim)
PAD = 128         # lane-dense padding of the tiny hidden dim
MAX_TILE = 8192   # row-tile cap: ~10 MiB VMEM incl. f32 intermediates (v7x-safe)


def _make_head_bce_kernel(label, rows, tile, need_mask, dense):
    """DiscHead (Linear -> LeakyReLU -> Linear) + BCE-with-logits partial sum.

    One grid step = one row tile of a single source. Writes its partial loss
    sum broadcast over its own (8,128) output block (lane-dense, disjoint per
    step, so the row-tile axis can be 'parallel').
    """
    label = float(label)
    rows = int(rows)
    tile = int(tile)

    def kernel(z_ref, w1_ref, b1_ref, w2_ref, b2_ref, out_ref):
        t = pl.program_id(0)

        # Linear(c_dim -> cmap_dim): bf16 operands on the MXU, f32 accumulate.
        # (in-kernel VPU cast — no wrapper-side bf16 copy pass)
        z = z_ref[...].astype(jnp.bfloat16)
        h = jnp.dot(z, w1_ref[...], preferred_element_type=jnp.float32)
        h = h + b1_ref[...]                          # (tile, PAD) f32
        h = jnp.where(h >= 0.0, h, 0.2 * h)          # LeakyReLU(0.2)

        # Linear(cmap_dim -> 1): broadcast-multiply + lane reduce (VPU + XLU).
        hw = h * w2_ref[...]
        b2 = b2_ref[0, 0]
        if dense:
            # Leading-dim split is layout-free; the lane reduce lands the
            # per-row logits in a lane-dense (tile//128, 128) block so the BCE
            # math below runs at full lane utilisation.
            hw = hw.reshape(tile // 128, 128, PAD)
            logits = jnp.sum(hw, axis=-1) + b2       # (tile//128, 128)
        else:
            # Tiny batches only (tile not a multiple of 128): lane-sparse path.
            logits = jnp.sum(hw, axis=-1, keepdims=True) + b2   # (tile, 1)

        # Stable BCE with logits: max(z,0) - z*y + log1p(exp(-|z|)).
        loss = jnp.maximum(logits, 0.0) + jnp.log1p(jnp.exp(-jnp.abs(logits)))
        if label != 0.0:
            loss = loss - logits * jnp.float32(label)

        if need_mask:
            # Mask rows past the true batch size (partial last tile). Select
            # (not multiply) so padding garbage cannot propagate into the sum.
            if dense:
                row = (t * tile
                       + 128 * lax.broadcasted_iota(jnp.int32, logits.shape, 0)
                       + lax.broadcasted_iota(jnp.int32, logits.shape, 1))
            else:
                row = t * tile + lax.broadcasted_iota(jnp.int32, logits.shape, 0)
            loss = jnp.where(row < rows, loss, 0.0)

        # Per-tile partial sum, broadcast over a lane-dense (8,128) block.
        out_ref[...] = jnp.full((8, 128), jnp.sum(loss), dtype=jnp.float32)

    return kernel


def _head_bce_sum(params, z, label, max_tile):
    """Sum over rows of BCE_with_logits(DiscHead(z), label) via one pallas_call."""
    w1p, b1p, w2p, b2p = params
    rows, c_dim = z.shape

    if rows <= max_tile:
        tile, num_tiles, need_mask = rows, 1, False        # one exact block
    else:
        tile = max_tile
        num_tiles = (rows + tile - 1) // tile
        need_mask = (rows % tile) != 0
    dense = (tile % 128 == 0)

    kernel = _make_head_bce_kernel(label, rows, tile, need_mask, dense)

    out = pl.pallas_call(
        kernel,
        out_shape=jax.ShapeDtypeStruct((num_tiles * 8, 128), jnp.float32),
        grid=(num_tiles,),
        in_specs=[
            pl.BlockSpec((tile, c_dim), lambda t: (t, 0)),        # z (f32)
            pl.BlockSpec((c_dim, PAD), lambda t: (0, 0)),         # w1 (bf16)
            pl.BlockSpec((1, PAD), lambda t: (0, 0)),             # b1 (f32)
            pl.BlockSpec((1, PAD), lambda t: (0, 0)),             # w2 row (f32)
            pl.BlockSpec(memory_space=pltpu.MemorySpace.SMEM),    # b2 scalar
        ],
        # One disjoint (8,128) block per grid step -> no shared accumulator, so
        # the row-tile axis can be sharded across v7x's two TensorCores.
        out_specs=pl.BlockSpec((8, 128), lambda t: (t, 0)),
        compiler_params=pltpu.CompilerParams(
            dimension_semantics=("parallel",),
            vmem_limit_bytes=48 * 1024 * 1024,
        ),
    )(z, w1p, b1p, w2p, b2p)

    # Each block holds its partial sum broadcast over (8,128); pick one element
    # per tile and reduce the tiny per-tile vector outside the kernel.
    return jnp.sum(out[0::8, 0])


def init_params(key, c_dim=C_DIM, cmap_dim=CMAP_DIM):
    """Deterministic synthetic init; returns (kernel params, raw f32 params)."""
    k1, k2, k3, k4 = jax.random.split(key, 4)
    w1 = jax.random.normal(k1, (c_dim, cmap_dim), jnp.float32) * 0.1
    b1 = jax.random.normal(k2, (cmap_dim,), jnp.float32) * 0.1
    w2 = jax.random.normal(k3, (cmap_dim, 1), jnp.float32) * 0.1
    b2 = jax.random.normal(k4, (1,), jnp.float32) * 0.1

    # Kernel-side packed params:
    #  - w1 lane-padded to PAD and stored bf16 (MXU-native)
    #  - w2 stored as a (1, PAD) f32 row (second Linear = mul + lane reduce)
    #  - b2 as a (1,1) f32 SMEM scalar
    w1p = (jnp.zeros((c_dim, PAD), jnp.float32)
           .at[:, :cmap_dim].set(w1).astype(jnp.bfloat16))
    b1p = jnp.zeros((1, PAD), jnp.float32).at[0, :cmap_dim].set(b1)
    w2p = jnp.zeros((1, PAD), jnp.float32).at[0, :cmap_dim].set(w2[:, 0])
    b2p = b2.reshape(1, 1)
    return (w1p, b1p, w2p, b2p), (w1, b1, w2, b2)


@functools.partial(jax.jit, static_argnames=("side", "max_tile"))
def projected_discriminator(params, x, c=None, side="D", max_tile=MAX_TILE):
    """Mirrors ProjectedDiscriminator.forward (returns the scalar BCE loss)."""
    if side == "D":
        # Ones-labels for head(x), zeros-labels for head(c); mean over both.
        sx = _head_bce_sum(params, x, 1.0, max_tile)
        sc = _head_bce_sum(params, c, 0.0, max_tile)
        n_total = x.shape[0] + c.shape[0]
        return (sx + sc) / jnp.float32(n_total)
    elif side == "G":
        sx = _head_bce_sum(params, x, 0.0, max_tile)
        return sx / jnp.float32(x.shape[0])
    else:
        raise ValueError(side)


def _reference(raw_params, x, c, side="D"):
    """Pure-JAX f32 reference of the PyTorch forward (for correctness check)."""
    w1, b1, w2, b2 = raw_params

    def head(t):
        h = t @ w1 + b1
        h = jnp.where(h >= 0, h, 0.2 * h)
        return h @ w2 + b2

    if side == "D":
        logits = jnp.concatenate([head(x), head(c)], axis=0)
        labels = jnp.concatenate(
            [jnp.ones((x.shape[0], 1)), jnp.zeros((c.shape[0], 1))], axis=0)
    else:
        logits = head(x)
        labels = jnp.zeros_like(logits)
    loss = (jnp.maximum(logits, 0.0) - logits * labels
            + jnp.log1p(jnp.exp(-jnp.abs(logits))))
    return jnp.mean(loss)


if __name__ == "__main__":
    key = jax.random.PRNGKey(0)
    kp, kx, kc = jax.random.split(key, 3)

    params, raw_params = init_params(kp)

    # 1) Small demo shapes (single exact block, lane-sparse logits path).
    B = 4
    x = jax.random.normal(kx, (B, C_DIM), jnp.float32)   # generator image features
    c = jax.random.normal(kc, (B, C_DIM), jnp.float32)   # clip text features
    loss_d = jax.block_until_ready(projected_discriminator(params, x, c, side="D"))
    loss_g = jax.block_until_ready(projected_discriminator(params, x, side="G"))
    ref_d = _reference(raw_params, x, c, side="D")
    ref_g = _reference(raw_params, x, None, side="G")
    # bf16 matmul operands -> relaxed (but still tight) tolerance vs f32 reference.
    assert jnp.allclose(loss_d, ref_d, atol=5e-3, rtol=5e-3), (loss_d, ref_d)
    assert jnp.allclose(loss_g, ref_g, atol=5e-3, rtol=5e-3), (loss_g, ref_g)

    # 2) Lane-dense single-block path (batch a multiple of 128).
    B2 = 256
    x2 = jax.random.normal(jax.random.fold_in(kx, 1), (B2, C_DIM), jnp.float32)
    c2 = jax.random.normal(jax.random.fold_in(kc, 1), (B2, C_DIM), jnp.float32)
    loss_d2 = jax.block_until_ready(projected_discriminator(params, x2, c2, side="D"))
    ref_d2 = _reference(raw_params, x2, c2, side="D")
    assert jnp.allclose(loss_d2, ref_d2, atol=5e-3, rtol=5e-3), (loss_d2, ref_d2)

    # 3) Multi-tile + partial-last-tile mask + unequal batches, exercised with a
    #    small max_tile so shapes stay tiny.
    B3x, B3c = 300, 200
    x3 = jax.random.normal(jax.random.fold_in(kx, 2), (B3x, C_DIM), jnp.float32)
    c3 = jax.random.normal(jax.random.fold_in(kc, 2), (B3c, C_DIM), jnp.float32)
    loss_d3 = jax.block_until_ready(
        projected_discriminator(params, x3, c3, side="D", max_tile=128))
    ref_d3 = _reference(raw_params, x3, c3, side="D")
    assert jnp.allclose(loss_d3, ref_d3, atol=5e-3, rtol=5e-3), (loss_d3, ref_d3)

    print("KERNEL_OK")
</pallas_src>

<mosaic_0001>
module attributes {stable_mosaic.version = 11 : i64} {
  func.func @kernel(%arg0: i32, %arg1: memref<4x32xf32, #tpu.memory_space<vmem>>, %arg2: memref<32x128xbf16, #tpu.memory_space<vmem>>, %arg3: memref<1x128xf32, #tpu.memory_space<vmem>>, %arg4: memref<1x128xf32, #tpu.memory_space<vmem>>, %arg5: memref<1x1xf32, #tpu.memory_space<smem>>, %arg6: memref<8x128xf32, #tpu.memory_space<vmem>>) attributes {dimension_semantics = [#tpu.dimension_semantics<parallel>], iteration_bounds = array<i64: 1>, scalar_prefetch = 0 : i64, scratch_operands = 0 : i64, tpu.core_type = #tpu.core_type<tc>, window_params = [{transform_indices = @transform_0, window_bounds = array<i64: 4, 32>}, {pipeline_mode = #tpu.pipeline_mode<synchronous>, transform_indices = @transform_1, window_bounds = array<i64: 32, 128>}, {pipeline_mode = #tpu.pipeline_mode<synchronous>, transform_indices = @transform_2, window_bounds = array<i64: 1, 128>}, {pipeline_mode = #tpu.pipeline_mode<synchronous>, transform_indices = @transform_3, window_bounds = array<i64: 1, 128>}, {transform_indices = @transform_4, window_bounds = array<i64: 1, 1>}, {transform_indices = @transform_5, window_bounds = array<i64: 8, 128>}]} {
    %c0 = arith.constant 0 : index
    %c0_0 = arith.constant 0 : index
    %0 = vector.load %arg1[%c0, %c0_0] : memref<4x32xf32, #tpu.memory_space<vmem>>, vector<4x32xf32>
    %1 = arith.truncf %0 : vector<4x32xf32> to vector<4x32xbf16>
    %c0_1 = arith.constant 0 : index
    %c0_2 = arith.constant 0 : index
    %2 = vector.load %arg2[%c0_1, %c0_2] : memref<32x128xbf16, #tpu.memory_space<vmem>>, vector<32x128xbf16>
    %cst = arith.constant dense<0.000000e+00> : vector<4x128xf32>
    %3 = tpu.matmul %1, %2, %cst {dimension_numbers = #tpu.dot_dimension_numbers<[1], [0], [0], [1], [0, 0, 1, 1], [], []>} : vector<4x32xbf16>, vector<32x128xbf16>, vector<4x128xf32> -> vector<4x128xf32>
    %c0_3 = arith.constant 0 : index
    %c0_4 = arith.constant 0 : index
    %4 = vector.load %arg3[%c0_3, %c0_4] : memref<1x128xf32, #tpu.memory_space<vmem>>, vector<1x128xf32>
    %5 = vector.broadcast %4 : vector<1x128xf32> to vector<4x128xf32>
    %6 = arith.addf %3, %5 : vector<4x128xf32>
    %cst_5 = arith.constant 0.000000e+00 : f32
    %7 = vector.broadcast %cst_5 : f32 to vector<4x128xf32>
    %8 = arith.cmpf oge, %6, %7 : vector<4x128xf32>
    %cst_6 = arith.constant 2.000000e-01 : f32
    %9 = vector.broadcast %cst_6 : f32 to vector<4x128xf32>
    %10 = arith.mulf %9, %6 : vector<4x128xf32>
    %11 = arith.select %8, %6, %10 : vector<4x128xi1>, vector<4x128xf32>
    %c0_7 = arith.constant 0 : index
    %c0_8 = arith.constant 0 : index
    %12 = vector.load %arg4[%c0_7, %c0_8] : memref<1x128xf32, #tpu.memory_space<vmem>>, vector<1x128xf32>
    %13 = vector.broadcast %12 : vector<1x128xf32> to vector<4x128xf32>
    %14 = arith.mulf %11, %13 : vector<4x128xf32>
    %c0_9 = arith.constant 0 : index
    %c0_10 = arith.constant 0 : index
    %15 = memref.load %arg5[%c0_9, %c0_10] : memref<1x1xf32, #tpu.memory_space<smem>>
    %cst_11 = arith.constant dense<0.000000e+00> : vector<4xf32>
    %16 = vector.multi_reduction <add>, %14, %cst_11 [1] : vector<4x128xf32> to vector<4xf32>
    %17 = vector.shape_cast %16 : vector<4xf32> to vector<4x1xf32>
    %18 = vector.broadcast %15 : f32 to vector<4x1xf32>
    %19 = arith.addf %17, %18 : vector<4x1xf32>
    %cst_12 = arith.constant 0.000000e+00 : f32
    %20 = vector.broadcast %cst_12 : f32 to vector<4x1xf32>
    %21 = arith.maximumf %19, %20 : vector<4x1xf32>
    %22 = math.absf %19 : vector<4x1xf32>
    %cst_13 = arith.constant 0.000000e+00 : f32
    %23 = vector.broadcast %cst_13 : f32 to vector<4x1xf32>
    %24 = arith.subf %23, %22 : vector<4x1xf32>
    %25 = math.exp %24 : vector<4x1xf32>
    %26 = math.log1p %25 : vector<4x1xf32>
    %27 = arith.addf %21, %26 : vector<4x1xf32>
    %28 = vector.shape_cast %27 : vector<4x1xf32> to vector<1x4x1xf32>
    %cst_14 = arith.constant dense<0.000000e+00> : vector<1xf32>
    %29 = vector.multi_reduction <add>, %28, %cst_14 [1, 2] : vector<1x4x1xf32> to vector<1xf32>
    %30 = vector.shape_cast %29 : vector<1xf32> to vector<1x1x1xf32>
    %31 = vector.extract %30[0, 0, 0] : f32 from vector<1x1x1xf32>
    %32 = vector.broadcast %31 : f32 to vector<8x128xf32>
    %c0_15 = arith.constant 0 : index
    %c0_16 = arith.constant 0 : index
    %33 = vector.load %arg6[%c0_15, %c0_16] : memref<8x128xf32, #tpu.memory_space<vmem>>, vector<8x128xf32>
    tpu.vector_store %arg6[%c0_15, %c0_16], %32 {strides = array<i32>} : memref<8x128xf32, #tpu.memory_space<vmem>>, vector<8x128xf32>,
    return
  }
  func.func @transform_0(%arg0: i32) -> (i32, i32) {
    %c0_i32 = arith.constant 0 : i32
    %c0_i32_0 = arith.constant 0 : i32
    return %arg0, %c0_i32 : i32, i32
  }
  func.func @transform_1(%arg0: i32) -> (i32, i32) {
    %c0_i32 = arith.constant 0 : i32
    %c0_i32_0 = arith.constant 0 : i32
    %c0_i32_1 = arith.constant 0 : i32
    return %c0_i32, %c0_i32_0 : i32, i32
  }
  func.func @transform_2(%arg0: i32) -> (i32, i32) {
    %c0_i32 = arith.constant 0 : i32
    %c0_i32_0 = arith.constant 0 : i32
    %c0_i32_1 = arith.constant 0 : i32
    return %c0_i32, %c0_i32_0 : i32, i32
  }
  func.func @transform_3(%arg0: i32) -> (i32, i32) {
    %c0_i32 = arith.constant 0 : i32
    %c0_i32_0 = arith.constant 0 : i32
    %c0_i32_1 = arith.constant 0 : i32
    return %c0_i32, %c0_i32_0 : i32, i32
  }
  func.func @transform_4(%arg0: i32) -> (i32, i32) {
    %c0_i32 = arith.constant 0 : i32
    %c0_i32_0 = arith.constant 0 : i32
    %c0_i32_1 = arith.constant 0 : i32
    return %c0_i32, %c0_i32_0 : i32, i32
  }
  func.func @transform_5(%arg0: i32) -> (i32, i32) {
    %c0_i32 = arith.constant 0 : i32
    %c0_i32_0 = arith.constant 0 : i32
    return %arg0, %c0_i32 : i32, i32
  }
}

module attributes {stable_mosaic.version = 11 : i64} {
  func.func @kernel(%arg0: i32, %arg1: memref<4x32xf32, #tpu.memory_space<vmem>>, %arg2: memref<32x128xbf16, #tpu.memory_space<vmem>>, %arg3: memref<1x128xf32, #tpu.memory_space<vmem>>, %arg4: memref<1x128xf32, #tpu.memory_space<vmem>>, %arg5: memref<1x1xf32, #tpu.memory_space<smem>>, %arg6: memref<8x128xf32, #tpu.memory_space<vmem>>) attributes {dimension_semantics = [#tpu.dimension_semantics<parallel>], iteration_bounds = array<i64: 1>, scalar_prefetch = 0 : i64, scratch_operands = 0 : i64, tpu.core_type = #tpu.core_type<tc>, window_params = [{transform_indices = @transform_0, window_bounds = array<i64: 4, 32>}, {pipeline_mode = #tpu.pipeline_mode<synchronous>, transform_indices = @transform_1, window_bounds = array<i64: 32, 128>}, {pipeline_mode = #tpu.pipeline_mode<synchronous>, transform_indices = @transform_2, window_bounds = array<i64: 1, 128>}, {pipeline_mode = #tpu.pipeline_mode<synchronous>, transform_indices = @transform_3, window_bounds = array<i64: 1, 128>}, {transform_indices = @transform_4, window_bounds = array<i64: 1, 1>}, {transform_indices = @transform_5, window_bounds = array<i64: 8, 128>}]} {
    %c0 = arith.constant 0 : index
    %c0_0 = arith.constant 0 : index
    %0 = vector.load %arg1[%c0, %c0_0] : memref<4x32xf32, #tpu.memory_space<vmem>>, vector<4x32xf32>
    %1 = arith.truncf %0 : vector<4x32xf32> to vector<4x32xbf16>
    %c0_1 = arith.constant 0 : index
    %c0_2 = arith.constant 0 : index
    %2 = vector.load %arg2[%c0_1, %c0_2] : memref<32x128xbf16, #tpu.memory_space<vmem>>, vector<32x128xbf16>
    %cst = arith.constant dense<0.000000e+00> : vector<4x128xf32>
    %3 = tpu.matmul %1, %2, %cst {dimension_numbers = #tpu.dot_dimension_numbers<[1], [0], [0], [1], [0, 0, 1, 1], [], []>} : vector<4x32xbf16>, vector<32x128xbf16>, vector<4x128xf32> -> vector<4x128xf32>
    %c0_3 = arith.constant 0 : index
    %c0_4 = arith.constant 0 : index
    %4 = vector.load %arg3[%c0_3, %c0_4] : memref<1x128xf32, #tpu.memory_space<vmem>>, vector<1x128xf32>
    %5 = vector.broadcast %4 : vector<1x128xf32> to vector<4x128xf32>
    %6 = arith.addf %3, %5 : vector<4x128xf32>
    %cst_5 = arith.constant 0.000000e+00 : f32
    %7 = vector.broadcast %cst_5 : f32 to vector<4x128xf32>
    %8 = arith.cmpf oge, %6, %7 : vector<4x128xf32>
    %cst_6 = arith.constant 2.000000e-01 : f32
    %9 = vector.broadcast %cst_6 : f32 to vector<4x128xf32>
    %10 = arith.mulf %9, %6 : vector<4x128xf32>
    %11 = arith.select %8, %6, %10 : vector<4x128xi1>, vector<4x128xf32>
    %c0_7 = arith.constant 0 : index
    %c0_8 = arith.constant 0 : index
    %12 = vector.load %arg4[%c0_7, %c0_8] : memref<1x128xf32, #tpu.memory_space<vmem>>, vector<1x128xf32>
    %13 = vector.broadcast %12 : vector<1x128xf32> to vector<4x128xf32>
    %14 = arith.mulf %11, %13 : vector<4x128xf32>
    %c0_9 = arith.constant 0 : index
    %c0_10 = arith.constant 0 : index
    %15 = memref.load %arg5[%c0_9, %c0_10] : memref<1x1xf32, #tpu.memory_space<smem>>
    %cst_11 = arith.constant dense<0.000000e+00> : vector<4xf32>
    %16 = vector.multi_reduction <add>, %14, %cst_11 [1] : vector<4x128xf32> to vector<4xf32>
    %17 = vector.shape_cast %16 : vector<4xf32> to vector<4x1xf32>
    %18 = vector.broadcast %15 : f32 to vector<4x1xf32>
    %19 = arith.addf %17, %18 : vector<4x1xf32>
    %cst_12 = arith.constant 0.000000e+00 : f32
    %20 = vector.broadcast %cst_12 : f32 to vector<4x1xf32>
    %21 = arith.maximumf %19, %20 : vector<4x1xf32>
    %22 = math.absf %19 : vector<4x1xf32>
    %cst_13 = arith.constant 0.000000e+00 : f32
    %23 = vector.broadcast %cst_13 : f32 to vector<4x1xf32>
    %24 = arith.subf %23, %22 : vector<4x1xf32>
    %25 = math.exp %24 : vector<4x1xf32>
    %26 = math.log1p %25 : vector<4x1xf32>
    %27 = arith.addf %21, %26 : vector<4x1xf32>
    %cst_14 = arith.constant 1.000000e+00 : f32
    %28 = vector.broadcast %cst_14 : f32 to vector<4x1xf32>
    %29 = arith.mulf %19, %28 : vector<4x1xf32>
    %30 = arith.subf %27, %29 : vector<4x1xf32>
    %31 = vector.shape_cast %30 : vector<4x1xf32> to vector<1x4x1xf32>
    %cst_15 = arith.constant dense<0.000000e+00> : vector<1xf32>
    %32 = vector.multi_reduction <add>, %31, %cst_15 [1, 2] : vector<1x4x1xf32> to vector<1xf32>
    %33 = vector.shape_cast %32 : vector<1xf32> to vector<1x1x1xf32>
    %34 = vector.extract %33[0, 0, 0] : f32 from vector<1x1x1xf32>
    %35 = vector.broadcast %34 : f32 to vector<8x128xf32>
    %c0_16 = arith.constant 0 : index
    %c0_17 = arith.constant 0 : index
    %36 = vector.load %arg6[%c0_16, %c0_17] : memref<8x128xf32, #tpu.memory_space<vmem>>, vector<8x128xf32>
    tpu.vector_store %arg6[%c0_16, %c0_17], %35 {strides = array<i32>} : memref<8x128xf32, #tpu.memory_space<vmem>>, vector<8x128xf32>,
    return
  }
  func.func @transform_0(%arg0: i32) -> (i32, i32) {
    %c0_i32 = arith.constant 0 : i32
    %c0_i32_0 = arith.constant 0 : i32
    return %arg0, %c0_i32 : i32, i32
  }
  func.func @transform_1(%arg0: i32) -> (i32, i32) {
    %c0_i32 = arith.constant 0 : i32
    %c0_i32_0 = arith.constant 0 : i32
    %c0_i32_1 = arith.constant 0 : i32
    return %c0_i32, %c0_i32_0 : i32, i32
  }
  func.func @transform_2(%arg0: i32) -> (i32, i32) {
    %c0_i32 = arith.constant 0 : i32
    %c0_i32_0 = arith.constant 0 : i32
    %c0_i32_1 = arith.constant 0 : i32
    return %c0_i32, %c0_i32_0 : i32, i32
  }
  func.func @transform_3(%arg0: i32) -> (i32, i32) {
    %c0_i32 = arith.constant 0 : i32
    %c0_i32_0 = arith.constant 0 : i32
    %c0_i32_1 = arith.constant 0 : i32
    return %c0_i32, %c0_i32_0 : i32, i32
  }
  func.func @transform_4(%arg0: i32) -> (i32, i32) {
    %c0_i32 = arith.constant 0 : i32
    %c0_i32_0 = arith.constant 0 : i32
    %c0_i32_1 = arith.constant 0 : i32
    return %c0_i32, %c0_i32_0 : i32, i32
  }
  func.func @transform_5(%arg0: i32) -> (i32, i32) {
    %c0_i32 = arith.constant 0 : i32
    %c0_i32_0 = arith.constant 0 : i32
    return %arg0, %c0_i32 : i32, i32
  }
}

</mosaic_0001>

<bundles_post_ra>
// kernel: projected_discriminator.3
= control target key start
LH: loop header
LB: loop body
LE: loop exit
PB: predicated region body
PF: predicated region fallthrough
CT: control target
= control target key end

     0   :  { %v167_v0 = vmov 0.0   ;;  %vm168_vm0 = vmmov 0   ;;  %vm47_vm1 = vcmask 261120   ;;  %vm103_vm3 = vcmask 1043456   ;;  %s220_s1 = inlined_call_operand.vmem [shape: bf16[32,128], index: 1, kind: input, shape index: {}]   ;;  %s221_s0 = inlined_call_operand.vmem [shape: f32[4,32], index: 0, kind: input, shape index: {}]   ;;  %s222_s2 = inlined_call_operand.vmem [shape: f32[1,128], index: 2, kind: input, shape index: {}]   ;;  %s223_s3 = inlined_call_operand.vmem [shape: f32[1,128], index: 3, kind: input, shape index: {}]   ;;  %s224_s4 = inlined_call_operand.<no memory space> [shape: f32[1,1], index: 4, kind: input, shape index: {}]   ;;  %s225_s5 = inlined_call_operand.vmem [shape: f32[8,128], index: 5, kind: output, shape index: {}]  }
   0x1   :  { %149 = vmatprep.subr.bf16.mxu0 %v167_v0  ;;  %v161_v1 = vld [vmem:[%s220_s1] sm:$0xff]   ;;  %153 = vmatprep.mubr.msk.bf16.mxu0 %vm168_vm0, %v167_v0  ;;  %v162_v2 = vld [vmem:[%s220_s1 + $0x8] sm:$0xff]   ;;  %v107_v16 = vstv %s224_s4  ;;  %vm124_vm5 = vcmask 3072  }
   0x2   :  { %150 = vmatpush3.bf16.msra.mxu0 %v161_v1  ;;  %v22_v3 = vld [vmem:[%s221_s0] sm:$0xf] }
   0x3   :  { %151 = vmatprep.subr.bf16.mxu0 %v167_v0  ;;  %v23_v4 = vpack.c.bf16 %v22_v3, %v22_v3  ;;  %v141_v5 = vld [vmem:[%s222_s2] ss:$0 sm:$0xff] }
   0x4   :  { %v145_v12 = vld [vmem:[%s223_s3] ss:$0 sm:$0xff] }
   0x6   :  { %152 = vmatpush3.bf16.msra.mxu0 %v162_v2 }
   0x9   :  { %154 = vmatmul.mubr.msk.bf16.vlgmr.msra.gmra.mrb[0].mxu0 %vm47_vm1, %v23_v4 }
  0xdc   :  { %v85_v6 = vpop.f32.mrb[0].mxu0 }
  0xdd   :  { %v86_v7 = vadd.f32 %v141_v5, %v85_v6  ;;  %v155_v8 = vpop.f32.mrb[1].mxu0 }
  0xde   :  { %v88_v9 = vpop.f32.mrb[2].mxu0 }
  0xdf   :  { %v92_v10 = vmul.f32 0.2, %v86_v7  ;;  %v156_v11 = vpop.f32.mrb[3].mxu0  ;;  %vm91_vm2 = vcmp.ge.f32.partialorder %v86_v7, 0.0 }
  0xe1   :  { %v93_v13 = vsel %vm91_vm2, %v86_v7, %v92_v10 }
  0xe2   :  { %v101_v14 = vmul.f32 %v145_v12, %v93_v13 }
  0xe4   :  { %v104_v15 = vsel %vm103_vm3, %v101_v14, 0.0 }
  0xe5   :  { %105 = vadd.xlane.f32.xlu0 %v104_v15 }
 0x172   :  { %v106_v17 = vpop.xlane.xlu0 %105 }
 0x173   :  { %v108_v18 = vadd.f32 %v107_v16, %v106_v17 }
 0x175   :  { %v110_v19 = vand.u32 2147483647, %v108_v18  ;;  %v109_v30 = vmax.f32 %v108_v18, 0.0 }
 0x177   :  { %v111_v20 = vsub.f32 0.0, %v110_v19 }
 0x179   :  { %v112_v21 = vmul.f32 1.442695, %v111_v20 }
 0x17b   :  { %163 = vpow2.f32 %v112_v21 }
 0x185   :  { %v164_v22 = vpop.eup %163 }
 0x186   :  { %v114_v23 = vadd.f32 1.0, %v164_v22  ;;  %v117_v24 = vmul.f32 -0.5, %v164_v22  ;;  %v120_v26 = vand.u32 2147483647, %v164_v22 }
 0x188   :  { %165 = vlog2.f32 %v114_v23  ;;  %v118_v25 = vadd.f32 1.0, %v117_v24  ;;  %vm121_vm4 = vcmp.lt.f32.partialorder %v120_v26, 0.0004427343 }
 0x18a   :  { %v119_v29 = vmul.f32 %v164_v22, %v118_v25 }
 0x192   :  { %v166_v27 = vpop.eup %165 }
 0x193   :  { %v116_v28 = vmul.f32 0.6931472, %v166_v27 }
 0x195   :  { %v122_v31 = vsel %vm121_vm4, %v119_v29, %v116_v28 }
 0x196   :  { %v123_v32 = vadd.f32 %v122_v31, %v109_v30 }
 0x198   :  { %v125_v33 = vsel %vm124_vm5, %v123_v32, 0.0 }
 0x199   :  { %126 = vadd.xlane.f32.xlu0 %v125_v33 }
 0x226   :  { %v127_v34 = vpop.xlane.xlu0 %126 }
 0x227   :  { %v128_v35 = vrot.slane %v127_v34, 4 }
 0x229   :  { %v129_v36 = vadd.f32 %v128_v35, %v127_v34 }
 0x22b   :  { %v130_v37 = vrot.slane %v129_v36, 2 }
 0x22d   :  { %v131_v38 = vadd.f32 %v130_v37, %v129_v36 }
 0x22f   :  { %v132_v39 = vrot.slane %v131_v38, 1 }
 0x231   :  { %v133_v40 = vadd.f32 %v132_v39, %v131_v38 }
 0x233   :  { %157 = vpush %v133_v40 }
 0x264   :  { %s158_s2 = spop %157 }
 0x265   :  { %v135_v41 = vstv %s158_s2 }
 0x266   :  { %136 = vst [vmem:[%s225_s5] sm:$0xff] %v135_v41 }

// kernel: projected_discriminator.2
= control target key start
LH: loop header
LB: loop body
LE: loop exit
PB: predicated region body
PF: predicated region fallthrough
CT: control target
= control target key end

     0   :  { %11 = vsyncpa [#allocation4], 0  ;;  %s327_s0 = inlined_call_operand.hbm [shape: f32[4,32], index: 0, kind: input, shape index: {}]   ;;  %s328_s1 = inlined_call_operand.hbm [shape: bf16[32,128], index: 1, kind: input, shape index: {}]   ;;  %s329_s2 = inlined_call_operand.vmem [shape: f32[1,128], index: 2, kind: input, shape index: {}]   ;;  %s330_s3 = inlined_call_operand.vmem [shape: f32[1,128], index: 3, kind: input, shape index: {}]   ;;  %s331_s4 = inlined_call_operand.<no memory space> [shape: f32[1,1], index: 4, kind: input, shape index: {}]   ;;  %s332_s5 = inlined_call_operand.vmem [shape: f32[8,128], index: 5, kind: output, shape index: {}]  }
   0x1   :  { %12 = vsyncpa [#allocation6], 0  ;;  %s248_s18 = smov [#allocation3]   ;;  %s249_s20 = smov [#allocation5]  }
   0x2   :  { %s19_s19 = sshll.u32 %s248_s18, 4  ;;  %s28_s21 = sshll.u32 %s249_s20, 4  ;;  %s20_s19 = int_to_ptr.vmem [resolvable:$true] %s19_s19  ;;  %s284_s21 = int_to_ptr.vmem [resolvable:$true] %s28_s21 }
   0x3   :  { %s200_s24 = scalar_lea.hbm %s327_s0, 64 }
   0x4   :  { %p201_p0 = scmp.ne.s32.totalorder %s327_s0, %s200_s24  ;;  %p204_p1 = scmp.lt.u32.totalorder %s200_s24, %s327_s0 }
   0x6   :  { %p206_p2 = pnand %p204_p1, %p201_p0 }
   0x8   :  { %209 = shalt.err (!%p206_p2)
}
   0x9   :  { %s210_s29 = scalar_lea.vmem %s20_s19, 64  ;;  %p215_p4 = scmp.lt.s32.totalorder %s20_s19, %s20_s19 }
   0xa   :  { %p211_p3 = scmp.ne.s32.totalorder %s20_s19, %s210_s29  ;;  %p216_p5 = scmp.lt.s32.totalorder %s210_s29, %s210_s29 }
   0xc   :  { %p217_p6 = por %p216_p5, %p215_p4 }
   0xe   :  { %p218_p7 = pnand %p217_p6, %p211_p3 }
  0x10   :  { %221 = shalt.err (!%p218_p7)
}
  0x11   :  { %22 = dma.hbm_to_vmem [thread:$0]  %s327_s0, 64, %s20_s19, [#allocation4]  }
  0x12   :  { %s222_s9 = scalar_lea.hbm %s328_s1, 256 }
  0x13   :  { %p223_p8 = scmp.ne.s32.totalorder %s328_s1, %s222_s9  ;;  %p226_p9 = scmp.lt.u32.totalorder %s222_s9, %s328_s1 }
  0x15   :  { %p228_p10 = pnand %p226_p9, %p223_p8 }
  0x17   :  { %231 = shalt.err (!%p228_p10)
}
  0x18   :  { %s232_s14 = scalar_lea.vmem %s284_s21, 256  ;;  %p237_p12 = scmp.lt.s32.totalorder %s284_s21, %s284_s21 }
  0x19   :  { %p233_p11 = scmp.ne.s32.totalorder %s284_s21, %s232_s14  ;;  %p238_p13 = scmp.lt.s32.totalorder %s232_s14, %s232_s14 }
  0x1b   :  { %p239_p0 = por %p238_p13, %p237_p12 }
  0x1d   :  { %p240_p1 = pnand %p239_p0, %p233_p11 }
  0x1f   :  { %243 = shalt.err (!%p240_p1)
}
  0x20   :  { %s250_s0 = smov 64   ;;  %s251_s15 = smov 4  }
  0x21   :  { %34 = dma.hbm_to_vmem [thread:$0]  %s328_s1, 256, %s284_s21, [#allocation6], %s250_s0, %s250_s0, %s251_s15  }
  0x22   :  { %244 = dma.done.wait [#allocation4], 64  }
  0x23   :  { %245 = vsyncadd [#allocation4], 4294967232 }
  0x24   :  { %246 = dma.done.wait [#allocation6], 256  }
  0x25   :  { %247 = vsyncadd [#allocation6], 4294967040  ;;  %v252_v0 = vmov 0.0   ;;  %vm253_vm0 = vmmov 0   ;;  %v194_v1 = vld [vmem:[#allocation5] sm:$0xff]   ;;  %v195_v2 = vld [vmem:[#allocation5 + $0x8] sm:$0xff]   ;;  %v133_v16 = vstv %s331_s4 }
  0x26   :  { %178 = vmatprep.subr.bf16.mxu0 %v252_v0  ;;  %182 = vmatprep.mubr.msk.bf16.mxu0 %vm253_vm0, %v252_v0  ;;  %v48_v3 = vld [vmem:[#allocation3] sm:$0xf]  ;;  %vm73_vm1 = vcmask 261120   ;;  %vm129_vm3 = vcmask 1043456   ;;  %vm151_vm5 = vcmask 3072  }
  0x27   :  { %179 = vmatpush3.bf16.msra.mxu0 %v194_v1  ;;  %v49_v4 = vpack.c.bf16 %v48_v3, %v48_v3  ;;  %v170_v5 = vld [vmem:[%s329_s2] ss:$0 sm:$0xff] }
  0x28   :  { %180 = vmatprep.subr.bf16.mxu0 %v252_v0  ;;  %v174_v12 = vld [vmem:[%s330_s3] ss:$0 sm:$0xff] }
  0x2b   :  { %181 = vmatpush3.bf16.msra.mxu0 %v195_v2 }
  0x2e   :  { %183 = vmatmul.mubr.msk.bf16.vlgmr.msra.gmra.mrb[0].mxu0 %vm73_vm1, %v49_v4 }
 0x101   :  { %v111_v6 = vpop.f32.mrb[0].mxu0 }
 0x102   :  { %v112_v7 = vadd.f32 %v170_v5, %v111_v6  ;;  %v184_v8 = vpop.f32.mrb[1].mxu0 }
 0x103   :  { %v114_v9 = vpop.f32.mrb[2].mxu0 }
 0x104   :  { %v118_v10 = vmul.f32 0.2, %v112_v7  ;;  %v185_v11 = vpop.f32.mrb[3].mxu0  ;;  %vm117_vm2 = vcmp.ge.f32.partialorder %v112_v7, 0.0 }
 0x106   :  { %v119_v13 = vsel %vm117_vm2, %v112_v7, %v118_v10 }
 0x107   :  { %v127_v14 = vmul.f32 %v174_v12, %v119_v13 }
 0x109   :  { %v130_v15 = vsel %vm129_vm3, %v127_v14, 0.0 }
 0x10a   :  { %131 = vadd.xlane.f32.xlu0 %v130_v15 }
 0x197   :  { %v132_v17 = vpop.xlane.xlu0 %131 }
 0x198   :  { %v134_v18 = vadd.f32 %v133_v16, %v132_v17 }
 0x19a   :  { %v136_v19 = vand.u32 2147483647, %v134_v18  ;;  %v135_v30 = vmax.f32 %v134_v18, 0.0 }
 0x19c   :  { %v137_v20 = vsub.f32 0.0, %v136_v19 }
 0x19e   :  { %v138_v21 = vmul.f32 1.442695, %v137_v20 }
 0x1a0   :  { %196 = vpow2.f32 %v138_v21 }
 0x1aa   :  { %v197_v22 = vpop.eup %196 }
 0x1ab   :  { %v140_v23 = vadd.f32 1.0, %v197_v22  ;;  %v143_v24 = vmul.f32 -0.5, %v197_v22  ;;  %v146_v26 = vand.u32 2147483647, %v197_v22 }
 0x1ad   :  { %198 = vlog2.f32 %v140_v23  ;;  %v144_v25 = vadd.f32 1.0, %v143_v24  ;;  %vm147_vm4 = vcmp.lt.f32.partialorder %v146_v26, 0.0004427343 }
 0x1af   :  { %v145_v29 = vmul.f32 %v197_v22, %v144_v25 }
 0x1b7   :  { %v199_v27 = vpop.eup %198 }
 0x1b8   :  { %v142_v28 = vmul.f32 0.6931472, %v199_v27 }
 0x1ba   :  { %v148_v31 = vsel %vm147_vm4, %v145_v29, %v142_v28 }
 0x1bb   :  { %v149_v32 = vadd.f32 %v148_v31, %v135_v30 }
 0x1bd   :  { %v150_v33 = vsub.f32 %v149_v32, %v134_v18 }
 0x1bf   :  { %v152_v34 = vsel %vm151_vm5, %v150_v33, 0.0 }
 0x1c0   :  { %153 = vadd.xlane.f32.xlu0 %v152_v34 }
 0x24d   :  { %v154_v35 = vpop.xlane.xlu0 %153 }
 0x24e   :  { %v155_v36 = vrot.slane %v154_v35, 4 }
 0x250   :  { %v156_v37 = vadd.f32 %v155_v36, %v154_v35 }
 0x252   :  { %v157_v38 = vrot.slane %v156_v37, 2 }
 0x254   :  { %v158_v39 = vadd.f32 %v157_v38, %v156_v37 }
 0x256   :  { %v159_v40 = vrot.slane %v158_v39, 1 }
 0x258   :  { %v160_v41 = vadd.f32 %v159_v40, %v158_v39 }
 0x25a   :  { %186 = vpush %v160_v41 }
 0x28b   :  { %s187_s2 = spop %186 }
 0x28c   :  { %v162_v42 = vstv %s187_s2 }
 0x28d   :  { %163 = vst [vmem:[%s332_s5] sm:$0xff] %v162_v42 }
 0x28e   :  { %168 = vsyncpa [#allocation4], 1 }
 0x28f   :  { %169 = vsyncpa [#allocation6], 1 }

</bundles_post_ra>
